<compile_context>
chip_gen: v5e
topology: v5e:2x2
jax: 0.10.0
libtpu: 0.0.40
codegen_flags: <defaults>
</compile_context>

<pallas_src>
import jax
import jax.numpy as jnp
from jax.experimental import pallas as pl
from jax.experimental.pallas import tpu as pltpu

MiB = 1024 * 1024


# ----------------------------------------------------------------------------
# Fused kernel: masked mean pool (seq grid axis) + pooler + all classifier heads
# ----------------------------------------------------------------------------
def _fused_kernel(emb_ref, invlen_ref, wp_ref, bp_ref, wc_ref, bc_ref,
                  out_ref, acc_ref):
    """grid = (batch tiles, seq tiles); seq axis is last and 'arbitrary'.

    emb_ref   : [tB, tS, D] bf16  gathered token embeddings (pad row zeroed)
    invlen_ref: [tB, 1]     f32   1 / (# non-pad tokens per row)
    wp_ref    : [D, D]      f32   pooler weight ([in, out])
    bp_ref    : [1, D]      f32   pooler bias
    wc_ref    : [D, Cp]     f32   all heads' classifier weights, concat + 128-padded
    bc_ref    : [1, Cp]     f32   concat + padded classifier biases
    out_ref   : [tB, Cp]    f32   concatenated logits (lane dense, Cp % 128 == 0)
    acc_ref   : [tB, D]     f32   VMEM scratch: running (masked) sum over seq
    """
    s = pl.program_id(1)

    @pl.when(s == 0)
    def _init():
        acc_ref[...] = jnp.zeros_like(acc_ref)

    # Pad-token row of the embedding table is zeroed in the wrapper, so a plain
    # sum over the sequence tile equals the attention-masked sum (no mask DMA,
    # no per-element mask multiply on the VPU).
    acc_ref[...] += jnp.sum(emb_ref[...].astype(jnp.float32), axis=1)

    @pl.when(s == pl.num_programs(1) - 1)
    def _finalize():
        pooled = acc_ref[...] * invlen_ref[...]                       # [tB, D]
        rep = jnp.tanh(
            jnp.dot(pooled, wp_ref[...], preferred_element_type=jnp.float32)
            + bp_ref[...]
        )
        # Dropout(0.4): identity in eval mode (inference semantics).
        # TODO(synk): training-mode stochastic dropout (pltpu.prng_*) not emitted.
        out_ref[...] = (
            jnp.dot(rep, wc_ref[...], preferred_element_type=jnp.float32)
            + bc_ref[...]
        ).astype(out_ref.dtype)


# ----------------------------------------------------------------------------
# Tile / VMEM sizing helpers
# ----------------------------------------------------------------------------
def _vmem_capacity_bytes():
    """Physical VMEM of the current chip; conservative 64 MiB (v7x) fallback."""
    try:
        info = pltpu.get_tpu_info()
        cap = int(getattr(info, "vmem_capacity_bytes", 0))
        if cap > 0:
            return cap
    except Exception:
        pass
    return 64 * MiB


def _largest_tile(total, cap, multiple):
    """Largest t <= cap with total % t == 0 and t % multiple == 0; else the full axis."""
    if total <= cap:
        return total
    c = (cap // multiple) * multiple
    while c >= multiple:
        if total % c == 0:
            return c
        c -= multiple
    return total  # fall back to the full (untiled) axis — always a legal block shape


def _pick_batch_tile(B, cap=256):
    """Batch tile: multiple of 8 dividing B, <= cap, preferring >= 2 batch tiles so the
    'parallel' batch axis can split across v7x's two TensorCores."""
    if B >= 16:
        t = (min(cap, B // 2) // 8) * 8
        while t >= 8:
            if B % t == 0:
                return t
            t -= 8
    return B  # full batch in one tile (block shape == full dim is always legal)


def _fused_forward(emb, inv_len, wp, bp, wc_all, bc_all):
    """Single pallas_call computing concatenated logits [B, Cp] for all heads."""
    B, S, D = emb.shape
    Cp = wc_all.shape[1]

    weight_bytes = (wp.size + bp.size + wc_all.size + bc_all.size) * 4

    tB = _pick_batch_tile(B)

    cap = _vmem_capacity_bytes()
    reserved = (2 * weight_bytes                  # double-buffered weight blocks
                + 2 * (tB * Cp * 4 + tB * 4)      # output + inv_len buffers
                + tB * D * 4                      # accumulator scratch
                + 8 * MiB)                        # compiler scratch / headroom
    # emb double-buffer budget: ~35% of physical VMEM minus reserved (cast temp +
    # double-buffer together then stay well under the physical cap on every chip).
    emb_budget = max(8 * MiB, int(0.35 * cap) - reserved)
    row_bytes = tB * D * emb.dtype.itemsize
    cap_s = max(8, emb_budget // (2 * row_bytes))
    tS = _largest_tile(S, cap_s, 8)

    emb_tile_bytes = tB * tS * D * emb.dtype.itemsize
    # 2x (double buffer) + ~2x (f32 reduce temp, worst case) + reserved
    needed = 4 * emb_tile_bytes + reserved
    vmem_limit = int(min(cap, max(32 * MiB, needed)))

    grid = (B // tB, S // tS)

    return pl.pallas_call(
        _fused_kernel,
        out_shape=jax.ShapeDtypeStruct((B, Cp), jnp.float32),
        grid_spec=pltpu.PrefetchScalarGridSpec(
            num_scalar_prefetch=0,
            grid=grid,
            in_specs=[
                pl.BlockSpec((tB, tS, D), lambda i, s: (i, s, 0)),
                pl.BlockSpec((tB, 1), lambda i, s: (i, 0)),
                pl.BlockSpec((D, D), lambda i, s: (0, 0)),
                pl.BlockSpec((1, D), lambda i, s: (0, 0)),
                pl.BlockSpec((D, Cp), lambda i, s: (0, 0)),
                pl.BlockSpec((1, Cp), lambda i, s: (0, 0)),
            ],
            out_specs=pl.BlockSpec((tB, Cp), lambda i, s: (i, 0)),
            scratch_shapes=[pltpu.VMEM((tB, D), jnp.float32)],
        ),
        compiler_params=pltpu.CompilerParams(
            dimension_semantics=("parallel", "arbitrary"),
            vmem_limit_bytes=vmem_limit,
        ),
    )(emb, inv_len, wp, bp, wc_all, bc_all)


# ----------------------------------------------------------------------------
# Parameters (mirroring the module's shapes / init semantics)
# ----------------------------------------------------------------------------
def init_params(key, vocab_size, d_model, class_num):
    """Each head's private backbone is a deepcopy (identical weights); each head
    Linear(d_model, num) has weight ~ N(0, 0.02) per torch.nn.init.normal_."""
    k_emb, k_wp, k_bp, *k_heads = jax.random.split(key, 3 + 2 * len(class_num))
    backbone = {
        "embedding": jax.random.normal(k_emb, (vocab_size, d_model), jnp.float32) * 0.02,
        "wp": jax.random.normal(k_wp, (d_model, d_model), jnp.float32)
        * (1.0 / jnp.sqrt(d_model)),
        "bp": jax.random.normal(k_bp, (1, d_model), jnp.float32) * 0.01,
    }
    heads = []
    for i, num in enumerate(class_num):
        kw, kb = k_heads[2 * i], k_heads[2 * i + 1]
        heads.append({
            # stored as [in, out] (transposed vs. PyTorch [out, in])
            "wc": jax.random.normal(kw, (d_model, num), jnp.float32) * 0.02,
            "bc": jax.random.uniform(kb, (1, num), jnp.float32, minval=-0.02, maxval=0.02),
        })
    privates = [backbone for _ in class_num]  # deepcopies -> identical weights
    return privates, heads


def prepare_fused_params(privates, heads, class_num):
    """One-time prep: zero the pad row, bf16 the emb stream, concat + pad heads."""
    # The private backbones are deepcopies of one module -> identical weights, so
    # the backbone rep is computed exactly once and shared across heads.
    # TODO(synk): if per-head backbones are fine-tuned independently, revert to a
    # per-head rep computation.
    bb = privates[0]
    emb_table = bb["embedding"].at[0].set(0.0).astype(jnp.bfloat16)
    wp = bb["wp"].astype(jnp.float32)
    bp = bb["bp"].astype(jnp.float32)

    d_model = wp.shape[0]
    c_total = int(sum(class_num))
    c_pad = ((c_total + 127) // 128) * 128   # lane-dense output width
    wc_all = jnp.zeros((d_model, c_pad), jnp.float32)
    bc_all = jnp.zeros((1, c_pad), jnp.float32)
    offsets, off = [], 0
    for head, num in zip(heads, class_num):
        wc_all = wc_all.at[:, off:off + num].set(head["wc"])
        bc_all = bc_all.at[:, off:off + num].set(head["bc"])
        offsets.append(off)
        off += num
    return dict(emb_table=emb_table, wp=wp, bp=bp, wc_all=wc_all, bc_all=bc_all,
                offsets=offsets, class_num=list(class_num))


def class_model_forward(input_ids, fused):
    """Matches ClassModel.forward: returns a list of [B, num_i] logits."""
    mask = (input_ids != 0)
    lens = jnp.maximum(jnp.sum(mask, axis=1, keepdims=True).astype(jnp.float32), 1.0)
    inv_len = 1.0 / lens                                     # tiny [B, 1] wrapper op
    # TODO(synk): move the gather in-kernel (scalar-prefetch input_ids + DMA gather
    # from a pl.ANY embedding table) to avoid the HBM round-trip of the gathered
    # [B, S, D] block; kept wrapper-side here for robust lowering.
    emb = jnp.take(fused["emb_table"], input_ids, axis=0)    # [B, S, D] bf16
    logits_all = _fused_forward(emb, inv_len, fused["wp"], fused["bp"],
                                fused["wc_all"], fused["bc_all"])
    return [logits_all[:, off:off + num]
            for off, num in zip(fused["offsets"], fused["class_num"])]


def _reference_forward(input_ids, privates, heads):
    """Pure-JAX reference with the same boundary numerics (bf16 emb, zero pad row)."""
    mask = (input_ids != 0).astype(jnp.float32)
    lens = jnp.maximum(jnp.sum(mask, axis=1, keepdims=True), 1.0)
    out = []
    for bb, head in zip(privates, heads):
        table = bb["embedding"].at[0].set(0.0).astype(jnp.bfloat16).astype(jnp.float32)
        emb = jnp.take(table, input_ids, axis=0)
        pooled = jnp.sum(emb * mask[..., None], axis=1) / lens
        rep = jnp.tanh(pooled @ bb["wp"] + bb["bp"])
        out.append(rep @ head["wc"] + head["bc"])
    return out


if __name__ == "__main__":
    B, S, D = 2, 8, 32
    VOCAB = 50
    CLASS_NUM = [3, 5]

    key = jax.random.PRNGKey(0)
    k_params, k_ids = jax.random.split(key)

    privates, heads = init_params(k_params, VOCAB, D, CLASS_NUM)
    fused = prepare_fused_params(privates, heads, CLASS_NUM)

    # deterministic input_ids with some padding zeros (id 0 == pad)
    input_ids = jax.random.randint(k_ids, (B, S), minval=0, maxval=VOCAB, dtype=jnp.int32)
    input_ids = input_ids.at[:, 0].set(1)        # ensure at least one real token per row
    input_ids = input_ids.at[:, S - 2:].set(0)   # force some padding

    outs = class_model_forward(input_ids, fused)
    outs = [jax.block_until_ready(o) for o in outs]

    refs = _reference_forward(input_ids, privates, heads)
    for o, r, num in zip(outs, refs, CLASS_NUM):
        assert o.shape == (B, num), o.shape
        assert jnp.allclose(o, r, atol=1e-5, rtol=1e-4), float(jnp.max(jnp.abs(o - r)))

    print("KERNEL_OK")
</pallas_src>

<mosaic_0001>
module attributes {stable_mosaic.version = 11 : i64} {
  func.func @_fused_kernel(%arg0: i32, %arg1: i32, %arg2: memref<2x8x32xbf16, #tpu.memory_space<vmem>>, %arg3: memref<2x1xf32, #tpu.memory_space<vmem>>, %arg4: memref<32x32xf32, #tpu.memory_space<vmem>>, %arg5: memref<1x32xf32, #tpu.memory_space<vmem>>, %arg6: memref<32x128xf32, #tpu.memory_space<vmem>>, %arg7: memref<1x128xf32, #tpu.memory_space<vmem>>, %arg8: memref<2x128xf32, #tpu.memory_space<vmem>>, %arg9: memref<2x32xf32, #tpu.memory_space<vmem>>) attributes {dimension_semantics = [#tpu.dimension_semantics<parallel>, #tpu.dimension_semantics<arbitrary>], iteration_bounds = array<i64: 1, 1>, scalar_prefetch = 0 : i64, scratch_operands = 1 : i64, tpu.core_type = #tpu.core_type<tc>, window_params = [{transform_indices = @transform_0, window_bounds = array<i64: 2, 8, 32>}, {transform_indices = @transform_1, window_bounds = array<i64: 2, 1>}, {pipeline_mode = #tpu.pipeline_mode<synchronous>, transform_indices = @transform_2, window_bounds = array<i64: 32, 32>}, {pipeline_mode = #tpu.pipeline_mode<synchronous>, transform_indices = @transform_3, window_bounds = array<i64: 1, 32>}, {pipeline_mode = #tpu.pipeline_mode<synchronous>, transform_indices = @transform_4, window_bounds = array<i64: 32, 128>}, {pipeline_mode = #tpu.pipeline_mode<synchronous>, transform_indices = @transform_5, window_bounds = array<i64: 1, 128>}, {transform_indices = @transform_6, window_bounds = array<i64: 2, 128>}]} {
    %c0_i32 = arith.constant 0 : i32
    %0 = arith.cmpi eq, %arg1, %c0_i32 : i32
    %1 = arith.extui %0 : i1 to i32
    %c0_i32_0 = arith.constant 0 : i32
    %2 = arith.cmpi ne, %1, %c0_i32_0 : i32
    scf.if %2 {
      %cst_9 = arith.constant 0.000000e+00 : f32
      %12 = vector.broadcast %cst_9 : f32 to vector<2x32xf32>
      %c0_10 = arith.constant 0 : index
      %c0_11 = arith.constant 0 : index
      %13 = vector.load %arg9[%c0_10, %c0_11] : memref<2x32xf32, #tpu.memory_space<vmem>>, vector<2x32xf32>
      tpu.vector_store %arg9[%c0_10, %c0_11], %12 {strides = array<i32>} : memref<2x32xf32, #tpu.memory_space<vmem>>, vector<2x32xf32>,
    } else {
    }
    %c0 = arith.constant 0 : index
    %c0_1 = arith.constant 0 : index
    %3 = vector.load %arg9[%c0, %c0_1] : memref<2x32xf32, #tpu.memory_space<vmem>>, vector<2x32xf32>
    %c0_2 = arith.constant 0 : index
    %c0_3 = arith.constant 0 : index
    %c0_4 = arith.constant 0 : index
    %4 = vector.load %arg2[%c0_2, %c0_3, %c0_4] : memref<2x8x32xbf16, #tpu.memory_space<vmem>>, vector<2x8x32xbf16>
    %5 = arith.extf %4 : vector<2x8x32xbf16> to vector<2x8x32xf32>
    %cst = arith.constant dense<0.000000e+00> : vector<2x32xf32>
    %6 = vector.multi_reduction <add>, %5, %cst [1] : vector<2x8x32xf32> to vector<2x32xf32>
    %7 = arith.addf %3, %6 : vector<2x32xf32>
    %c0_5 = arith.constant 0 : index
    %c0_6 = arith.constant 0 : index
    %8 = vector.load %arg9[%c0_5, %c0_6] : memref<2x32xf32, #tpu.memory_space<vmem>>, vector<2x32xf32>
    tpu.vector_store %arg9[%c0_5, %c0_6], %7 {strides = array<i32>} : memref<2x32xf32, #tpu.memory_space<vmem>>, vector<2x32xf32>,
    %c0_i32_7 = arith.constant 0 : i32
    %9 = arith.cmpi eq, %arg1, %c0_i32_7 : i32
    %10 = arith.extui %9 : i1 to i32
    %c0_i32_8 = arith.constant 0 : i32
    %11 = arith.cmpi ne, %10, %c0_i32_8 : i32
    scf.if %11 {
      %c0_9 = arith.constant 0 : index
      %c0_10 = arith.constant 0 : index
      %12 = vector.load %arg9[%c0_9, %c0_10] : memref<2x32xf32, #tpu.memory_space<vmem>>, vector<2x32xf32>
      %c0_11 = arith.constant 0 : index
      %c0_12 = arith.constant 0 : index
      %13 = vector.load %arg3[%c0_11, %c0_12] : memref<2x1xf32, #tpu.memory_space<vmem>>, vector<2x1xf32>
      %14 = vector.broadcast %13 : vector<2x1xf32> to vector<2x32xf32>
      %15 = arith.mulf %12, %14 : vector<2x32xf32>
      %c0_13 = arith.constant 0 : index
      %c0_14 = arith.constant 0 : index
      %16 = vector.load %arg4[%c0_13, %c0_14] : memref<32x32xf32, #tpu.memory_space<vmem>>, vector<32x32xf32>
      %cst_15 = arith.constant dense<0.000000e+00> : vector<2x32xf32>
      %17 = tpu.matmul %15, %16, %cst_15 {dimension_numbers = #tpu.dot_dimension_numbers<[1], [0], [0], [1], [0, 0, 1, 1], [], []>} : vector<2x32xf32>, vector<32x32xf32>, vector<2x32xf32> -> vector<2x32xf32>
      %c0_16 = arith.constant 0 : index
      %c0_17 = arith.constant 0 : index
      %18 = vector.load %arg5[%c0_16, %c0_17] : memref<1x32xf32, #tpu.memory_space<vmem>>, vector<1x32xf32>
      %19 = vector.broadcast %18 : vector<1x32xf32> to vector<2x32xf32>
      %20 = arith.addf %17, %19 : vector<2x32xf32>
      %21 = math.tanh %20 : vector<2x32xf32>
      %c0_18 = arith.constant 0 : index
      %c0_19 = arith.constant 0 : index
      %22 = vector.load %arg6[%c0_18, %c0_19] : memref<32x128xf32, #tpu.memory_space<vmem>>, vector<32x128xf32>
      %cst_20 = arith.constant dense<0.000000e+00> : vector<2x128xf32>
      %23 = tpu.matmul %21, %22, %cst_20 {dimension_numbers = #tpu.dot_dimension_numbers<[1], [0], [0], [1], [0, 0, 1, 1], [], []>} : vector<2x32xf32>, vector<32x128xf32>, vector<2x128xf32> -> vector<2x128xf32>
      %c0_21 = arith.constant 0 : index
      %c0_22 = arith.constant 0 : index
      %24 = vector.load %arg7[%c0_21, %c0_22] : memref<1x128xf32, #tpu.memory_space<vmem>>, vector<1x128xf32>
      %25 = vector.broadcast %24 : vector<1x128xf32> to vector<2x128xf32>
      %26 = arith.addf %23, %25 : vector<2x128xf32>
      %c0_23 = arith.constant 0 : index
      %c0_24 = arith.constant 0 : index
      %27 = vector.load %arg8[%c0_23, %c0_24] : memref<2x128xf32, #tpu.memory_space<vmem>>, vector<2x128xf32>
      tpu.vector_store %arg8[%c0_23, %c0_24], %26 {strides = array<i32>} : memref<2x128xf32, #tpu.memory_space<vmem>>, vector<2x128xf32>,
    } else {
    }
    return
  }
  func.func @transform_0(%arg0: i32, %arg1: i32) -> (i32, i32, i32) {
    %c0_i32 = arith.constant 0 : i32
    %c0_i32_0 = arith.constant 0 : i32
    return %arg0, %arg1, %c0_i32 : i32, i32, i32
  }
  func.func @transform_1(%arg0: i32, %arg1: i32) -> (i32, i32) {
    %c0_i32 = arith.constant 0 : i32
    %c0_i32_0 = arith.constant 0 : i32
    return %arg0, %c0_i32 : i32, i32
  }
  func.func @transform_2(%arg0: i32, %arg1: i32) -> (i32, i32) {
    %c0_i32 = arith.constant 0 : i32
    %c0_i32_0 = arith.constant 0 : i32
    %c0_i32_1 = arith.constant 0 : i32
    return %c0_i32, %c0_i32_0 : i32, i32
  }
  func.func @transform_3(%arg0: i32, %arg1: i32) -> (i32, i32) {
    %c0_i32 = arith.constant 0 : i32
    %c0_i32_0 = arith.constant 0 : i32
    %c0_i32_1 = arith.constant 0 : i32
    return %c0_i32, %c0_i32_0 : i32, i32
  }
  func.func @transform_4(%arg0: i32, %arg1: i32) -> (i32, i32) {
    %c0_i32 = arith.constant 0 : i32
    %c0_i32_0 = arith.constant 0 : i32
    %c0_i32_1 = arith.constant 0 : i32
    return %c0_i32, %c0_i32_0 : i32, i32
  }
  func.func @transform_5(%arg0: i32, %arg1: i32) -> (i32, i32) {
    %c0_i32 = arith.constant 0 : i32
    %c0_i32_0 = arith.constant 0 : i32
    %c0_i32_1 = arith.constant 0 : i32
    return %c0_i32, %c0_i32_0 : i32, i32
  }
  func.func @transform_6(%arg0: i32, %arg1: i32) -> (i32, i32) {
    %c0_i32 = arith.constant 0 : i32
    %c0_i32_0 = arith.constant 0 : i32
    return %arg0, %c0_i32 : i32, i32
  }
}

</mosaic_0001>

<bundles_post_ra>
// kernel: tpu_custom_call.1
= control target key start
LH: loop header
LB: loop body
LE: loop exit
PB: predicated region body
PF: predicated region fallthrough
CT: control target
= control target key end

     0   :  { %11 = vsyncpa [#allocation4], 0  ;;  %s393_s0 = inlined_call_operand.hbm [shape: bf16[2,8,32], index: 0, kind: input, shape index: {}]   ;;  %s394_s1 = inlined_call_operand.vmem [shape: f32[2,1], index: 1, kind: input, shape index: {}]   ;;  %s395_s2 = inlined_call_operand.hbm [shape: f32[32,32], index: 2, kind: input, shape index: {}]   ;;  %s396_s3 = inlined_call_operand.vmem [shape: f32[1,32], index: 3, kind: input, shape index: {}]   ;;  %s397_s4 = inlined_call_operand.hbm [shape: f32[32,128], index: 4, kind: input, shape index: {}]   ;;  %s398_s5 = inlined_call_operand.vmem [shape: f32[1,128], index: 5, kind: input, shape index: {}]   ;;  %s399_s6 = inlined_call_operand.hbm [shape: f32[2,128], index: 6, kind: output, shape index: {}]  }
   0x1   :  { %12 = vsyncpa [#allocation7], 0  ;;  %s33_s23 = sshll.u32 %s395_s2, 4  ;;  %s34_s23 = int_to_ptr.hbm [resolvable:$true] %s33_s23 }
   0x2   :  { %13 = vsyncpa [#allocation5], 0  ;;  %s321_s24 = smov [#allocation6]   ;;  %s18_s28 = sshll.u32 %s393_s0, 4  ;;  %s19_s28 = int_to_ptr.hbm [resolvable:$true] %s18_s28 }
   0x3   :  { %s35_s25 = sshll.u32 %s321_s24, 4  ;;  %s322_s29 = smov 128   ;;  %s36_s25 = int_to_ptr.vmem [resolvable:$true] %s35_s25 }
   0x4   :  { %s323_s30 = smov 8   ;;  %s324_s7 = smov [#allocation3]  }
   0x5   :  { %41 = dma.hbm_to_vmem [thread:$0]  %s34_s23, 512, %s36_s25, [#allocation7], %s322_s29, %s322_s29, %s323_s30  }
   0x6   :  { %s20_s8 = sshll.u32 %s324_s7, 4  ;;  %s325_s9 = smov 64   ;;  %s21_s8 = int_to_ptr.vmem [resolvable:$true] %s20_s8 }
   0x7   :  { %s326_s10 = smov 4   ;;  %s48_s12 = sshll.u32 %s397_s4, 4  ;;  %s49_s12 = int_to_ptr.hbm [resolvable:$true] %s48_s12 }
   0x8   :  { %26 = dma.hbm_to_vmem [thread:$0]  %s19_s28, 128, %s21_s8, [#allocation4], %s325_s9, %s325_s9, %s326_s10  }
   0x9   :  { %s327_s13 = smov [#allocation8]  }
   0xa   :  { %s50_s14 = sshll.u32 %s327_s13, 4  ;;  %s51_s14 = int_to_ptr.vmem [resolvable:$true] %s50_s14 }
   0xb   :  { %56 = dma.hbm_to_vmem [thread:$0]  %s49_s12, 512, %s51_s14, [#allocation7], %s322_s29, %s322_s29, %s323_s30  }
   0xc   :  { %315 = dma.done.wait [#allocation4], 128  }
   0xd   :  { %316 = vsyncadd [#allocation4], 4294967168 }
   0xe   :  { %317 = dma.done.wait [#allocation7], 1024  }
   0xf   :  { %318 = vsyncadd [#allocation7], 4294966272  ;;  %vm75_vm0 = vcmask 254976   ;;  %v328_v0 = vmov 0   ;;  %v329_v1 = vmov 0.0   ;;  %v119_v3 = vld [vmem:[#allocation6 + $0x18] sm:$0xff] }
  0x10   :  { %214 = vset.pattern.permute.xlu0 %v328_v0  ;;  %76 = vst.msk [vmem:[#allocation2] sm:$0x3] %vm75_vm0, %v329_v1  ;;  %v109_v2 = vld [vmem:[%s394_s1] sm:$0x3]  ;;  %139 = vmatpush.msra.mxu0 %v119_v3  ;;  %v117_v5 = vld [vmem:[#allocation6 + $0x8] sm:$0xff]  ;;  %vm82_vm1 = vcmask 261120  }
  0x11   :  { %v118_v4 = vld [vmem:[#allocation6 + $0x10] sm:$0xff]  ;;  %112 = vperm.xlu0 %214, %v109_v2   ;;  %v201_v6 = vld [vmem:[#allocation3] sm:$0xff]   ;;  %vm99_vm2 = vcmask 1041409   ;;  %v116_v26 = vld [vmem:[#allocation6] sm:$0xff]  ;;  %s330_s18 = smov [#allocation9]   ;;  %s187_s22 = sshll.u32 %s399_s6, 4  ;;  %s188_s22 = int_to_ptr.hbm [resolvable:$true] %s187_s22 }
  0x12   :  { %140 = vmatpush.msra.mxu0 %v118_v4  ;;  %v202_v7 = vunpack.c.l.bf16 %v201_v6  ;;  %v203_v8 = vunpack.c.h.bf16 %v201_v6  ;;  %v151_v30 = vld [vmem:[#allocation8 + $0x18] sm:$0xff]  ;;  %v150_v31 = vld [vmem:[#allocation8 + $0x10] sm:$0xff]  ;;  %v149_v32 = vld [vmem:[#allocation8 + $0x8] sm:$0xff]  ;;  %s185_s19 = sshll.u32 %s330_s18, 4  ;;  %s186_s19 = int_to_ptr.vmem [resolvable:$true] %s185_s19 }
  0x13   :  { %171 = vmatpush.msra.mxu1 %v151_v30  ;;  %v148_v33 = vld [vmem:[#allocation8] sm:$0xff]  ;;  %v215_v34 = vld [vmem:[%s396_s3] ss:$0 sm:$0xff] }
  0x14   :  { %141 = vmatpush.msra.mxu0 %v117_v5  ;;  %v83_v9 = vsel %vm82_vm1, %v202_v7, 0.0  ;;  %v90_v10 = vsel %vm82_vm1, %v203_v8, 0.0  ;;  %v216_v38 = vld [vmem:[%s398_s5] ss:$0 sm:$0xff] }
  0x15   :  { %v84_v11 = vrot.slane %v83_v9, 4  ;;  %v91_v12 = vrot.slane %v90_v10, 4  ;;  %172 = vmatpush.msra.mxu1 %v150_v31 }
  0x16   :  { %142 = vmatpush.msra.mxu0 %v116_v26 }
  0x17   :  { %v85_v13 = vadd.f32 %v84_v11, %v83_v9  ;;  %v92_v14 = vadd.f32 %v91_v12, %v90_v10  ;;  %v77_v23 = vld [vmem:[#allocation2] sm:$0x3]  ;;  %173 = vmatpush.msra.mxu1 %v149_v32 }
  0x19   :  { %v86_v15 = vrot.slane %v85_v13, 2  ;;  %v93_v16 = vrot.slane %v92_v14, 2  ;;  %174 = vmatpush.msra.mxu1 %v148_v33 }
  0x1b   :  { %v87_v17 = vadd.f32 %v86_v15, %v85_v13  ;;  %v94_v18 = vadd.f32 %v93_v16, %v92_v14 }
  0x1d   :  { %v88_v19 = vrot.slane %v87_v17, 1  ;;  %v95_v20 = vrot.slane %v94_v18, 1 }
  0x1f   :  { %v89_v21 = vadd.f32 %v88_v19, %v87_v17  ;;  %v96_v22 = vadd.f32 %v95_v20, %v94_v18 }
  0x21   :  { %v100_v24 = vsel %vm99_vm2, %v96_v22, %v89_v21 }
  0x22   :  { %v102_v25 = vadd.f32 %v100_v24, %v77_v23 }
  0x24   :  { %104 = vst.msk [vmem:[#allocation2] sm:$0x3] %vm75_vm0, %v102_v25 }
  0x2b   :  { %v108_v27 = vld [vmem:[#allocation2] sm:$0x3] }
  0x83   :  { %v113_v28 = vpop.permute.xlu0 %112 }
  0x84   :  { %v115_v29 = vmul.f32 %v113_v28, %v108_v27 }
  0x86   :  { %198 = vmatmul.msk.f32.vlgmr.msra.gmra.mxu0 %vm82_vm1, %v115_v29 }
 0x103   :  { %v144_v35 = vpop.f32.mrf.mxu0 }
 0x104   :  { %v145_v36 = vadd.f32 %v215_v34, %v144_v35 }
 0x106   :  { %217 = vtanh.f32 %v145_v36 }
 0x10c   :  { %v218_v37 = vpop.eup %217 }
 0x10d   :  { %199 = vmatmul.msk.f32.vlgmr.msra.gmra.mxu1 %vm82_vm1, %v218_v37 }
 0x18a   :  { %v176_v39 = vpop.f32.mrf.mxu1 }
 0x18b   :  { %v177_v40 = vadd.f32 %v216_v38, %v176_v39 }
 0x18d   :  { %179 = vst [vmem:[#allocation9] sm:$0x3] %v177_v40 }
 0x18e   :  { %190 = dma.vmem_to_hbm [thread:$0]  %s186_s19, 32, %s188_s22, [#allocation5]  }
 0x18f   :  { %319 = dma.done.wait [#allocation5], 32  }
 0x190   :  { %320 = vsyncadd [#allocation5], 4294967264 }
 0x191   :  { %195 = vsyncpa [#allocation4], 1 }
 0x192   :  { %196 = vsyncpa [#allocation7], 1 }
 0x193   :  { %197 = vsyncpa [#allocation5], 1 }

</bundles_post_ra>
